<compile_context>
chip_gen: v7x
topology: tpu7x:2x2x1
jax: 0.10.0
libtpu: 0.0.40
codegen_flags: <defaults>
</compile_context>

<pallas_src>
import functools

import jax
import jax.numpy as jnp
from jax.experimental import pallas as pl
from jax.experimental.pallas import tpu as pltpu


def _hutchinson_kernel(x_ref, v_ref, w1_ref, b1_ref, w2_ref, b2_ref,
                       dxs_ref, div_ref, *, mxu_dtype):
    x = x_ref[...]                       # [TB, D] f32
    v = v_ref[...]                       # [TB, D] f32 Rademacher noise
    w1 = w1_ref[...].astype(mxu_dtype)   # [D, H]
    w2 = w2_ref[...].astype(mxu_dtype)   # [H, D]
    b1 = b1_ref[...]                     # [1, H] f32
    b2 = b2_ref[...]                     # [1, D] f32
    tb = x.shape[0]

    # ---- shared W1 matmul: one weight push for forward (x@W1) and VJP (v@W1) ----
    xv = jnp.concatenate([x, v], axis=0).astype(mxu_dtype)            # [2TB, D]
    hu = jnp.dot(xv, w1, preferred_element_type=jnp.float32)          # [2TB, H] f32
    h = hu[:tb] + b1                                                  # [TB, H]
    u = hu[tb:]                                                       # [TB, H] = v @ W1

    # ---- forward: dxs = f(xs) ----
    a = jnp.tanh(h)                                                   # f32 (EUP/VPU)
    dxs = jnp.dot(a.astype(mxu_dtype), w2,
                  preferred_element_type=jnp.float32) + b2            # [TB, D]
    dxs_ref[...] = dxs.astype(dxs_ref.dtype)

    # ---- VJP with cotangent = noise (no transposed W2 copy: contract dim 1) ----
    grad_a = jax.lax.dot_general(
        v.astype(mxu_dtype), w2,
        dimension_numbers=(((1,), (1,)), ((), ())),
        preferred_element_type=jnp.float32)                           # [TB, H]
    grad_h = grad_a * (1.0 - a * a)                                   # tanh' in f32

    # divergence[b] = sum_d (grad_h @ W1^T)[b,d] * v[b,d]
    #              = sum_h grad_h[b,h] * (v @ W1)[b,h]   (noise_ddxs never built)
    div_ref[...] = jnp.sum(grad_h * u, axis=1,
                           keepdims=True).astype(div_ref.dtype)       # [TB, 1]
    # TODO(synk): frobenius_term (sum(noise_ddxs**2, 1)) is computed but never
    # returned by the PyTorch module, so it is omitted here.


def hutchinson_estimator(t, xs, noise, w1, b1, b2, w2, *,
                         use_bf16_matmul=True, tb=None):
    """Returns (dxs, divergence) like HutchinsonEstimator.forward (Hutchinson path).

    `t` is accepted for API parity but the dynamics here are autonomous.
    """
    # TODO(synk): brute_force=True divergence loop and the stateful noise
    # resampling (_reset_noise) are host-side module behavior, not kernel work.
    del t
    B, D = xs.shape
    H = w1.shape[1]
    if tb is None:
        tb = min(B, 256)                 # batch tile; MXU-row-sized when B is large
    n_tiles = pl.cdiv(B, tb)

    b1_2d = b1.reshape(1, H).astype(jnp.float32)
    b2_2d = b2.reshape(1, D).astype(jnp.float32)
    mxu_dtype = jnp.bfloat16 if use_bf16_matmul else jnp.float32

    # Explicit VMEM budget (double-buffered batch tiles + resident weights + slack),
    # clamped so a v6e-sized plan cannot silently exceed v7x's smaller VMEM.
    io_block_bytes = (3 * tb * D + tb) * 4            # x, v, dxs blocks + div block
    weight_bytes = (D * H + H + H * D + D) * 4
    vmem_limit = min(max(4 * io_block_bytes + 4 * weight_bytes + (1 << 20),
                         8 << 20), 32 << 20)

    kernel = functools.partial(_hutchinson_kernel, mxu_dtype=mxu_dtype)

    out_shapes = (
        jax.ShapeDtypeStruct((B, D), xs.dtype),   # dxs
        jax.ShapeDtypeStruct((B, 1), jnp.float32),  # divergence (module layout)
    )
    dxs, divergence = pl.pallas_call(
        kernel,
        out_shape=out_shapes,
        grid=(n_tiles,),
        in_specs=[
            pl.BlockSpec((tb, D), lambda i: (i, 0)),   # xs    (tiled over batch)
            pl.BlockSpec((tb, D), lambda i: (i, 0)),   # noise (tiled over batch)
            pl.BlockSpec((D, H), lambda i: (0, 0)),    # W1 (resident across steps)
            pl.BlockSpec((1, H), lambda i: (0, 0)),    # b1
            pl.BlockSpec((H, D), lambda i: (0, 0)),    # W2
            pl.BlockSpec((1, D), lambda i: (0, 0)),    # b2
        ],
        out_specs=(
            pl.BlockSpec((tb, D), lambda i: (i, 0)),
            pl.BlockSpec((tb, 1), lambda i: (i, 0)),
        ),
        compiler_params=pltpu.CompilerParams(
            dimension_semantics=("parallel",),
            vmem_limit_bytes=vmem_limit),
    )(xs, noise, w1, b1_2d, w2, b2_2d)
    return dxs, divergence


def _reference(xs, noise, w1, b1, b2, w2):
    """Pure-JAX reference using jax.vjp (mirrors torch.autograd.grad)."""
    def f(x):
        return jnp.tanh(x @ w1 + b1) @ w2 + b2

    dxs, vjp_fn = jax.vjp(f, xs)
    (noise_ddxs,) = vjp_fn(noise)
    divergence = jnp.sum(noise_ddxs * noise, axis=1, keepdims=True)
    return dxs, divergence


if __name__ == "__main__":
    B, D, H = 8, 32, 64  # batch, system_dim, hidden

    key = jax.random.PRNGKey(0)
    k_x, k_w1, k_b1, k_w2, k_b2, k_noise = jax.random.split(key, 6)

    xs = jax.random.normal(k_x, (B, D), dtype=jnp.float32)
    # Deterministic parameter init (synthetic weights, no checkpoint load).
    w1 = jax.random.normal(k_w1, (D, H), dtype=jnp.float32) * 0.1
    b1 = jax.random.normal(k_b1, (H,), dtype=jnp.float32) * 0.01
    w2 = jax.random.normal(k_w2, (H, D), dtype=jnp.float32) * 0.1
    b2 = jax.random.normal(k_b2, (D,), dtype=jnp.float32) * 0.01
    # Rademacher noise: randint(0, 2) * 2 - 1  (matches _reset_noise branch).
    noise = (jax.random.randint(k_noise, (B, D), 0, 2).astype(jnp.float32)
             * 2.0 - 1.0)

    t = jnp.float32(0.0)
    dxs_ref, div_ref = _reference(xs, noise, w1, b1, b2, w2)

    # f32-MXU path: exact module semantics, tight check.
    dxs32, div32 = hutchinson_estimator(t, xs, noise, w1, b1, b2, w2,
                                        use_bf16_matmul=False)
    jax.block_until_ready((dxs32, div32))
    assert dxs32.shape == (B, D) and div32.shape == (B, 1)
    assert jnp.allclose(dxs32, dxs_ref, atol=1e-5, rtol=1e-5)
    assert jnp.allclose(div32, div_ref, atol=1e-4, rtol=1e-4)

    # bf16-MXU fast path (v6e/v7x): f32 accumulation and f32 vector math,
    # tolerances loosened for bf16 operand rounding (estimator is stochastic).
    dxs16, div16 = hutchinson_estimator(t, xs, noise, w1, b1, b2, w2,
                                        use_bf16_matmul=True)
    jax.block_until_ready((dxs16, div16))
    assert jnp.allclose(dxs16, dxs_ref, atol=2e-2, rtol=2e-2)
    assert jnp.allclose(div16, div_ref, atol=1e-1, rtol=5e-2)

    print("KERNEL_OK")
</pallas_src>

<mosaic_0001>
module attributes {stable_mosaic.version = 11 : i64} {
  func.func @_hutchinson_kernel(%arg0: i32, %arg1: memref<8x32xf32, #tpu.memory_space<vmem>>, %arg2: memref<8x32xf32, #tpu.memory_space<vmem>>, %arg3: memref<32x64xf32, #tpu.memory_space<vmem>>, %arg4: memref<1x64xf32, #tpu.memory_space<vmem>>, %arg5: memref<64x32xf32, #tpu.memory_space<vmem>>, %arg6: memref<1x32xf32, #tpu.memory_space<vmem>>, %arg7: memref<8x32xf32, #tpu.memory_space<vmem>>, %arg8: memref<8x1xf32, #tpu.memory_space<vmem>>) attributes {dimension_semantics = [#tpu.dimension_semantics<parallel>], iteration_bounds = array<i64: 1>, scalar_prefetch = 0 : i64, scratch_operands = 0 : i64, tpu.core_type = #tpu.core_type<tc>, window_params = [{transform_indices = @transform_0, window_bounds = array<i64: 8, 32>}, {transform_indices = @transform_1, window_bounds = array<i64: 8, 32>}, {pipeline_mode = #tpu.pipeline_mode<synchronous>, transform_indices = @transform_2, window_bounds = array<i64: 32, 64>}, {pipeline_mode = #tpu.pipeline_mode<synchronous>, transform_indices = @transform_3, window_bounds = array<i64: 1, 64>}, {pipeline_mode = #tpu.pipeline_mode<synchronous>, transform_indices = @transform_4, window_bounds = array<i64: 64, 32>}, {pipeline_mode = #tpu.pipeline_mode<synchronous>, transform_indices = @transform_5, window_bounds = array<i64: 1, 32>}, {transform_indices = @transform_6, window_bounds = array<i64: 8, 32>}, {transform_indices = @transform_7, window_bounds = array<i64: 8, 1>}]} {
    %c0 = arith.constant 0 : index
    %c0_0 = arith.constant 0 : index
    %0 = vector.load %arg1[%c0, %c0_0] : memref<8x32xf32, #tpu.memory_space<vmem>>, vector<8x32xf32>
    %c0_1 = arith.constant 0 : index
    %c0_2 = arith.constant 0 : index
    %1 = vector.load %arg2[%c0_1, %c0_2] : memref<8x32xf32, #tpu.memory_space<vmem>>, vector<8x32xf32>
    %c0_3 = arith.constant 0 : index
    %c0_4 = arith.constant 0 : index
    %2 = vector.load %arg3[%c0_3, %c0_4] : memref<32x64xf32, #tpu.memory_space<vmem>>, vector<32x64xf32>
    %c0_5 = arith.constant 0 : index
    %c0_6 = arith.constant 0 : index
    %3 = vector.load %arg5[%c0_5, %c0_6] : memref<64x32xf32, #tpu.memory_space<vmem>>, vector<64x32xf32>
    %c0_7 = arith.constant 0 : index
    %c0_8 = arith.constant 0 : index
    %4 = vector.load %arg4[%c0_7, %c0_8] : memref<1x64xf32, #tpu.memory_space<vmem>>, vector<1x64xf32>
    %c0_9 = arith.constant 0 : index
    %c0_10 = arith.constant 0 : index
    %5 = vector.load %arg6[%c0_9, %c0_10] : memref<1x32xf32, #tpu.memory_space<vmem>>, vector<1x32xf32>
    %6 = tpu.concatenate %0, %1 in 0 : vector<8x32xf32>, vector<8x32xf32> -> vector<16x32xf32>
    %cst = arith.constant dense<0.000000e+00> : vector<16x64xf32>
    %7 = tpu.matmul %6, %2, %cst {dimension_numbers = #tpu.dot_dimension_numbers<[1], [0], [0], [1], [0, 0, 1, 1], [], []>} : vector<16x32xf32>, vector<32x64xf32>, vector<16x64xf32> -> vector<16x64xf32>
    %8 = vector.extract_strided_slice %7 {offsets = [0, 0], sizes = [8, 64], strides = [1, 1]} : vector<16x64xf32> to vector<8x64xf32>
    %9 = vector.broadcast %4 : vector<1x64xf32> to vector<8x64xf32>
    %10 = arith.addf %8, %9 : vector<8x64xf32>
    %11 = vector.extract_strided_slice %7 {offsets = [8, 0], sizes = [8, 64], strides = [1, 1]} : vector<16x64xf32> to vector<8x64xf32>
    %12 = math.tanh %10 : vector<8x64xf32>
    %cst_11 = arith.constant dense<0.000000e+00> : vector<8x32xf32>
    %13 = tpu.matmul %12, %3, %cst_11 {dimension_numbers = #tpu.dot_dimension_numbers<[1], [0], [0], [1], [0, 0, 1, 1], [], []>} : vector<8x64xf32>, vector<64x32xf32>, vector<8x32xf32> -> vector<8x32xf32>
    %14 = vector.broadcast %5 : vector<1x32xf32> to vector<8x32xf32>
    %15 = arith.addf %13, %14 : vector<8x32xf32>
    %c0_12 = arith.constant 0 : index
    %c0_13 = arith.constant 0 : index
    %16 = vector.load %arg7[%c0_12, %c0_13] : memref<8x32xf32, #tpu.memory_space<vmem>>, vector<8x32xf32>
    tpu.vector_store %arg7[%c0_12, %c0_13], %15 {strides = array<i32>} : memref<8x32xf32, #tpu.memory_space<vmem>>, vector<8x32xf32>,
    %cst_14 = arith.constant dense<0.000000e+00> : vector<8x64xf32>
    %17 = tpu.matmul %1, %3, %cst_14 {dimension_numbers = #tpu.dot_dimension_numbers<[1], [1], [0], [0], [0, 0, 1, 0], [], []>} : vector<8x32xf32>, vector<64x32xf32>, vector<8x64xf32> -> vector<8x64xf32>
    %18 = arith.mulf %12, %12 : vector<8x64xf32>
    %cst_15 = arith.constant 1.000000e+00 : f32
    %19 = vector.broadcast %cst_15 : f32 to vector<8x64xf32>
    %20 = arith.subf %19, %18 : vector<8x64xf32>
    %21 = arith.mulf %17, %20 : vector<8x64xf32>
    %22 = arith.mulf %21, %11 : vector<8x64xf32>
    %cst_16 = arith.constant dense<0.000000e+00> : vector<8xf32>
    %23 = vector.multi_reduction <add>, %22, %cst_16 [1] : vector<8x64xf32> to vector<8xf32>
    %24 = vector.shape_cast %23 : vector<8xf32> to vector<8x1xf32>
    %c0_17 = arith.constant 0 : index
    %c0_18 = arith.constant 0 : index
    %25 = vector.load %arg8[%c0_17, %c0_18] : memref<8x1xf32, #tpu.memory_space<vmem>>, vector<8x1xf32>
    tpu.vector_store %arg8[%c0_17, %c0_18], %24 {strides = array<i32>} : memref<8x1xf32, #tpu.memory_space<vmem>>, vector<8x1xf32>,
    return
  }
  func.func @transform_0(%arg0: i32) -> (i32, i32) {
    %c0_i32 = arith.constant 0 : i32
    %c0_i32_0 = arith.constant 0 : i32
    return %arg0, %c0_i32 : i32, i32
  }
  func.func @transform_1(%arg0: i32) -> (i32, i32) {
    %c0_i32 = arith.constant 0 : i32
    %c0_i32_0 = arith.constant 0 : i32
    return %arg0, %c0_i32 : i32, i32
  }
  func.func @transform_2(%arg0: i32) -> (i32, i32) {
    %c0_i32 = arith.constant 0 : i32
    %c0_i32_0 = arith.constant 0 : i32
    %c0_i32_1 = arith.constant 0 : i32
    return %c0_i32, %c0_i32_0 : i32, i32
  }
  func.func @transform_3(%arg0: i32) -> (i32, i32) {
    %c0_i32 = arith.constant 0 : i32
    %c0_i32_0 = arith.constant 0 : i32
    %c0_i32_1 = arith.constant 0 : i32
    return %c0_i32, %c0_i32_0 : i32, i32
  }
  func.func @transform_4(%arg0: i32) -> (i32, i32) {
    %c0_i32 = arith.constant 0 : i32
    %c0_i32_0 = arith.constant 0 : i32
    %c0_i32_1 = arith.constant 0 : i32
    return %c0_i32, %c0_i32_0 : i32, i32
  }
  func.func @transform_5(%arg0: i32) -> (i32, i32) {
    %c0_i32 = arith.constant 0 : i32
    %c0_i32_0 = arith.constant 0 : i32
    %c0_i32_1 = arith.constant 0 : i32
    return %c0_i32, %c0_i32_0 : i32, i32
  }
  func.func @transform_6(%arg0: i32) -> (i32, i32) {
    %c0_i32 = arith.constant 0 : i32
    %c0_i32_0 = arith.constant 0 : i32
    return %arg0, %c0_i32 : i32, i32
  }
  func.func @transform_7(%arg0: i32) -> (i32, i32) {
    %c0_i32 = arith.constant 0 : i32
    %c0_i32_0 = arith.constant 0 : i32
    return %arg0, %c0_i32 : i32, i32
  }
}

</mosaic_0001>

<bundles_post_ra>
// kernel: tpu_custom_call.1
= control target key start
LH: loop header
LB: loop body
LE: loop exit
PB: predicated region body
PF: predicated region fallthrough
CT: control target
= control target key end

     0   :  { %vm42_vm0 = vcmask 261120   ;;  %v487_v3 = vmov 0.0|0.0   ;;  %vm488_vm2 = vmmov 0   ;;  %v489_v11 = vmov 0.0   ;;  %s614_s0 = inlined_call_operand.vmem [shape: f32[8,32], index: 0, kind: input, shape index: {}]   ;;  %s615_s1 = inlined_call_operand.vmem [shape: f32[8,32], index: 1, kind: input, shape index: {}]   ;;  %s616_s2 = inlined_call_operand.vmem [shape: f32[32,64], index: 2, kind: input, shape index: {}]   ;;  %s617_s3 = inlined_call_operand.vmem [shape: f32[1,64], index: 3, kind: input, shape index: {}]   ;;  %s618_s4 = inlined_call_operand.vmem [shape: f32[64,32], index: 4, kind: input, shape index: {}]   ;;  %s619_s5 = inlined_call_operand.vmem [shape: f32[1,32], index: 5, kind: input, shape index: {}]   ;;  %s620_s6 = inlined_call_operand.hbm [shape: f32[8,32], index: 6, kind: output, shape index: {0}]   ;;  %s621_s7 = inlined_call_operand.vmem [shape: f32[8,1], index: 7, kind: output, shape index: {1}]  }
   0x1   :  { %v28_v0 = vld [vmem:[%s616_s2] sm:$0xff]  ;;  %v29_v1 = vld [vmem:[%s616_s2 + $0x8] sm:$0xff]  ;;  %441 = vmatprep.subr.bf16.mxu0 %v487_v3  ;;  %vm545_vm1 = vmpackc.low %vm42_vm0, %vm42_vm0  ;;  %418 = vmatprep.mubr.msk.f32.mxu0 %vm488_vm2, %v489_v11 }
   0x2   :  { %v32_v2 = vld [vmem:[%s618_s4] sm:$0xff]  ;;  %v421_v4 = vpack.c.bf16 %v29_v1, %v28_v0  ;;  %v33_v5 = vld [vmem:[%s618_s4 + $0x8] sm:$0xff]  ;;  %v30_v7 = vld [vmem:[%s616_s2 + $0x10] sm:$0xff] }
   0x3   :  { %v430_v8 = vpack.c.bf16 %v33_v5, %v32_v2  ;;  %v31_v9 = vld [vmem:[%s616_s2 + $0x18] sm:$0xff]  ;;  %v26_v10 = vld [vmem:[%s614_s0] sm:$0xff]  ;;  %v34_v13 = vld [vmem:[%s618_s4 + $0x10] sm:$0xff] }
   0x4   :  { %422 = vmatprep.subr.bf16.mxu1 %v421_v4  ;;  %v425_v12 = vpack.c.bf16 %v31_v9, %v30_v7  ;;  %380 = vmatprep.mubr.msk.f32.mxu1 %vm42_vm0, %v26_v10  ;;  %v35_v14 = vld [vmem:[%s618_s4 + $0x18] sm:$0xff] }
   0x5   :  { %444 = vmatpush3.bf16.xpose.msk.msra.mxu0 %vm545_vm1, %v430_v8  ;;  %424 = vmatpush3.bf16.msra.mxu1 %v421_v4 }
   0x6   :  { %426 = vmatprep.subr.bf16.mxu1 %v425_v12  ;;  %445 = vmatprep.subr.bf16.mxu0 %v487_v3 }
   0x7   :  { %13 = vsyncpa [#allocation3], 0  ;;  %v27_v15 = vld [vmem:[%s615_s1] sm:$0xff]  ;;  %v433_v16 = vpack.c.bf16 %v35_v14, %v34_v13  ;;  %v37_v18 = vld [vmem:[%s618_s4 + $0x28] sm:$0xff]  ;;  %vm138_vm3 = vcmask 523264   ;;  %vm314_vm4 = vcmask 7168  }
   0x8   :  { %v36_v17 = vld [vmem:[%s618_s4 + $0x20] sm:$0xff]  ;;  %v38_v20 = vld [vmem:[%s618_s4 + $0x30] sm:$0xff]  ;;  %v39_v21 = vld [vmem:[%s618_s4 + $0x38] sm:$0xff]  ;;  %s490_s30 = smov [#allocation2]  }
   0x9   :  { %428 = vmatpush3.bf16.msra.mxu1 %v425_v12  ;;  %v436_v19 = vpack.c.bf16 %v37_v18, %v36_v17  ;;  %v439_v22 = vpack.c.bf16 %v39_v21, %v38_v20  ;;  %v336_v23 = vld [vmem:[%s617_s3] ss:$0 sm:$0xff]  ;;  %s322_s8 = sshll.u32 %s490_s30, 4  ;;  %s323_s8 = int_to_ptr.vmem [resolvable:$true] %s322_s8 }
   0xa   :  { %429 = vmatprep.subr.bf16.mxu1 %v487_v3  ;;  %v337_v36 = vld [vmem:[%s619_s5] ss:$0 sm:$0xff]  ;;  %s463_s9 = scalar_lea.vmem %s323_s8, 128  ;;  %p468_p1 = scmp.lt.s32.totalorder %s323_s8, %s323_s8 }
   0xb   :  { %p464_p0 = scmp.ne.s32.totalorder %s323_s8, %s463_s9  ;;  %p469_p2 = scmp.lt.s32.totalorder %s463_s9, %s463_s9 }
   0xc   :  { %381 = vmatmul.mubr.msk.f32.vlgmr.msra.gmra.mrb[0].mxu1 %vm42_vm0, %v27_v15 }
   0xd   :  { %448 = vmatpush3.bf16.xpose.msk.msra.mxu0 %vm545_vm1, %v433_v16  ;;  %431 = vmatpush3.bf16.msra.mxu1 %v430_v8  ;;  %p470_p3 = por %p469_p2, %p468_p1 }
   0xe   :  { %449 = vmatprep.subr.bf16.mxu0 %v487_v3  ;;  %432 = vmatprep.subr.bf16.mxu1 %v487_v3 }
   0xf   :  { %399 = vmatprep.mubr.msk.f32.mxu1 %vm488_vm2, %v489_v11  ;;  %p471_p4 = pnand %p470_p3, %p464_p0 }
  0x11   :  { %434 = vmatpush3.bf16.msra.mxu1 %v433_v16 }
  0x12   :  { %435 = vmatprep.subr.bf16.mxu1 %v487_v3 }
  0x15   :  { %452 = vmatpush3.bf16.xpose.msk.msra.mxu0 %vm545_vm1, %v436_v19  ;;  %437 = vmatpush3.bf16.msra.mxu1 %v436_v19 }
  0x16   :  { %453 = vmatprep.subr.bf16.mxu0 %v487_v3  ;;  %438 = vmatprep.subr.bf16.mxu1 %v487_v3 }
  0x19   :  { %440 = vmatpush3.bf16.msra.mxu1 %v439_v22 }
  0x1d   :  { %456 = vmatpush3.bf16.xpose.msk.msra.mxu0 %vm545_vm1, %v439_v22 }
  0x24   :  { %419 = vmatmul.mubr.msk.f32.vlgmr.msra.gmra.mrb[0].mxu0 %vm42_vm0, %v27_v15 }
  0xdf   :  { %v382_v24 = vpop.f32.mrb[0].mxu1 }
  0xe0   :  { %v115_v25 = vpop.f32.mrb[1].mxu1 }
  0xe1   :  { %v130_v26 = vadd.f32 %v336_v23, %v115_v25 }
  0xe3   :  { %461 = vtanh.f32 %v130_v26 }
  0xed   :  { %v462_v27 = vpop.eup %461 }
  0xee   :  { %400 = vmatmul.mubr.msk.f32.vlgmr.msra.gmra.mrb[2].mxu1 %vm138_vm3, %v462_v27  ;;  %v307_v28 = vmul.f32 %v462_v27, %v462_v27 }
  0xf0   :  { %v308_v29 = vsub.f32 1.0, %v307_v28 }
  0xf7   :  { %v303_v30 = vpop.f32.mrb[0].mxu0 }
  0xf8   :  { %v309_v31 = vmul.f32 %v308_v29, %v303_v30  ;;  %v420_v32 = vpop.f32.mrb[1].mxu0 }
  0xfa   :  { %v310_v33 = vmul.f32 %v382_v24, %v309_v31 }
  0xfc   :  { %v311_v34 = vsel %vm138_vm3, %v310_v33, 0.0 }
  0xfd   :  { %312 = vadd.xlane.f32.xlu0 %v311_v34 }
 0x18a   :  { %v313_v35 = vpop.xlane.xlu0 %312 }
 0x18b   :  { %315 = vst.msk [vmem:[%s621_s7] sm:$0xff] %vm314_vm4, %v313_v35 }
 0x1c1   :  { %v208_v37 = vpop.f32.mrb[2].mxu1 }
 0x1c2   :  { %v209_v38 = vadd.f32 %v337_v36, %v208_v37  ;;  %v401_v39 = vpop.f32.mrb[3].mxu1 }
 0x1c4   :  { %212 = vst.msk [vmem:[#allocation2] sm:$0xff] %vm42_vm0, %v209_v38 }
 0x1c5   :  { %474 = shalt.err (!%p471_p4)
}
 0x1c6   :  { %s475_s11 = scalar_lea.hbm %s620_s6, 128 }
 0x1c7   :  { %p476_p5 = scmp.ne.s32.totalorder %s620_s6, %s475_s11  ;;  %p479_p6 = scmp.lt.u32.totalorder %s475_s11, %s620_s6 }
 0x1c9   :  { %p481_p7 = pnand %p479_p6, %p476_p5 }
 0x1cb   :  { %484 = shalt.err (!%p481_p7)
}
 0x1cc   :  { %325 = dma.vmem_to_hbm [thread:$0]  %s323_s8, 128, %s620_s6, [#allocation3]  }
 0x1cd   :  { %485 = dma.done.wait [#allocation3], 128  }
 0x1ce   :  { %486 = vsyncadd [#allocation3], 4294967168 }
 0x1cf   :  { %333 = vsyncpa [#allocation3], 1 }

</bundles_post_ra>
